<compile_context>
chip_gen: v6e
topology: v6e:2x2x1
jax: 0.10.0
libtpu: 0.0.40
codegen_flags: <defaults>
</compile_context>

<pallas_src>
import functools

import jax
import jax.numpy as jnp
from jax import lax
from jax.experimental import pallas as pl
from jax.experimental.pallas import tpu as pltpu

IN_DIM = 28 * 28 + 1   # 785
HID = 100
OUT_DIM = 2

# Lane-aligned (128-multiple) padded dims.
IN_PAD = 896           # 7 * 128
HID_PAD = 128
OUT_PAD = 128
NEG_BIG = -1e30        # mask value for padded class lanes


def _round_up(n, m):
    return ((n + m - 1) // m) * m


def _mlp_kernel(x_ref, w1_ref, b1_ref, w2_ref, b2_ref, w3_ref, b3_ref, o_ref):
    # x: (TB, IN_PAD) bf16; weights bf16; biases f32; output (TB, OUT_PAD) f32.
    x = x_ref[...]

    # fc1 + ReLU (f32 accumulation on the MXU)
    h1 = jnp.dot(x, w1_ref[...], preferred_element_type=jnp.float32) + b1_ref[...]
    h1 = jnp.maximum(h1, 0.0)

    # fc2 + ReLU
    h2 = jnp.dot(h1.astype(jnp.bfloat16), w2_ref[...],
                 preferred_element_type=jnp.float32) + b2_ref[...]
    h2 = jnp.maximum(h2, 0.0)

    # fc3 (padded to 128 output lanes for a dense store)
    logits = jnp.dot(h2.astype(jnp.bfloat16), w3_ref[...],
                     preferred_element_type=jnp.float32) + b3_ref[...]

    # Padded class lanes must not affect the log-softmax.
    lane_idx = lax.broadcasted_iota(jnp.int32, logits.shape, dimension=1)
    logits = jnp.where(lane_idx < OUT_DIM, logits, NEG_BIG)

    # Numerically stable log-softmax over the last dim.
    m = jnp.max(logits, axis=-1, keepdims=True)
    shifted = logits - m
    lse = jnp.log(jnp.sum(jnp.exp(shifted), axis=-1, keepdims=True))
    o_ref[...] = shifted - lse


def _pad_params(params):
    """Zero-pad params to lane-aligned shapes; weights -> bf16, biases stay f32."""
    w1, b1, w2, b2, w3, b3 = params
    w1p = jnp.zeros((IN_PAD, HID_PAD), jnp.float32).at[:IN_DIM, :HID].set(w1)
    b1p = jnp.zeros((1, HID_PAD), jnp.float32).at[:, :HID].set(b1)
    w2p = jnp.zeros((HID_PAD, HID_PAD), jnp.float32).at[:HID, :HID].set(w2)
    b2p = jnp.zeros((1, HID_PAD), jnp.float32).at[:, :HID].set(b2)
    w3p = jnp.zeros((HID_PAD, OUT_PAD), jnp.float32).at[:HID, :OUT_DIM].set(w3)
    b3p = jnp.zeros((1, OUT_PAD), jnp.float32).at[:, :OUT_DIM].set(b3)
    return (w1p.astype(jnp.bfloat16), b1p,
            w2p.astype(jnp.bfloat16), b2p,
            w3p.astype(jnp.bfloat16), b3p)


@functools.partial(jax.jit, static_argnames=("block_b",))
def net_forward(x, params, *, block_b=512):
    """x: any shape reshapable to (-1, 785). Returns (B, 2) f32 log-probs."""
    x = x.reshape(-1, IN_DIM).astype(jnp.float32)
    B = x.shape[0]

    # Batch tile: multiple of 16 (bf16 sublane packing), capped at block_b.
    TB = min(block_b, _round_up(B, 16))
    Bp = _round_up(B, TB)
    grid = (Bp // TB,)

    # Pad batch rows (padding rows produce garbage log-probs, sliced off below)
    # and the feature dim 785 -> 896 with zeros; cast to bf16 for streaming.
    xp = jnp.zeros((Bp, IN_PAD), jnp.float32).at[:B, :IN_DIM].set(x)
    xp = xp.astype(jnp.bfloat16)

    w1, b1, w2, b2, w3, b3 = _pad_params(params)

    def resident(shape):
        # Weights / biases: same block every grid step -> DMA'd once, stay in VMEM.
        return pl.BlockSpec(shape, lambda i: (0, 0))

    flops = 2 * B * (IN_DIM * HID + HID * HID + HID * OUT_DIM)
    w_bytes = 2 * (IN_PAD * HID_PAD + HID_PAD * HID_PAD + HID_PAD * OUT_PAD)
    b_bytes = 4 * (HID_PAD + HID_PAD + OUT_PAD)
    bytes_accessed = Bp * IN_PAD * 2 + Bp * OUT_PAD * 4 + w_bytes + b_bytes

    out = pl.pallas_call(
        _mlp_kernel,
        out_shape=jax.ShapeDtypeStruct((Bp, OUT_PAD), jnp.float32),
        grid=grid,
        in_specs=[
            pl.BlockSpec((TB, IN_PAD), lambda i: (i, 0)),     # x tile (streamed)
            resident((IN_PAD, HID_PAD)),                      # w1
            resident((1, HID_PAD)),                           # b1
            resident((HID_PAD, HID_PAD)),                     # w2
            resident((1, HID_PAD)),                           # b2
            resident((HID_PAD, OUT_PAD)),                     # w3
            resident((1, OUT_PAD)),                           # b3
        ],
        out_specs=pl.BlockSpec((TB, OUT_PAD), lambda i: (i, 0)),
        compiler_params=pltpu.CompilerParams(
            dimension_semantics=("parallel",)),
        cost_estimate=pl.CostEstimate(
            flops=flops,
            transcendentals=B * (OUT_DIM + 1),
            bytes_accessed=bytes_accessed),
    )(xp, w1, b1, w2, b2, w3, b3)

    return out[:B, :OUT_DIM]


def init_params(key):
    """Deterministic init matching the PyTorch layer shapes.

    nn.Linear stores weight as (out, in); we keep (in, out) for the kernel.
    Uses uniform(-1/sqrt(fan_in), 1/sqrt(fan_in)) like PyTorch's default.
    """
    def linear(key, fan_in, fan_out):
        kw, kb = jax.random.split(key)
        bound = 1.0 / jnp.sqrt(fan_in)
        w = jax.random.uniform(kw, (fan_in, fan_out), jnp.float32, -bound, bound)
        b = jax.random.uniform(kb, (1, fan_out), jnp.float32, -bound, bound)
        return w, b

    k1, k2, k3 = jax.random.split(key, 3)
    w1, b1 = linear(k1, IN_DIM, HID)
    w2, b2 = linear(k2, HID, HID)
    w3, b3 = linear(k3, HID, OUT_DIM)
    return (w1, b1, w2, b2, w3, b3)


def reference_forward(x, params):
    """Pure-JAX reference using the same bf16-input / f32-accum recipe."""
    w1, b1, w2, b2, w3, b3 = params
    x = x.reshape(-1, IN_DIM).astype(jnp.float32)

    def mm(a, w):
        return jnp.dot(a.astype(jnp.bfloat16), w.astype(jnp.bfloat16),
                       preferred_element_type=jnp.float32)

    h1 = jnp.maximum(mm(x, w1) + b1, 0.0)
    h2 = jnp.maximum(mm(h1, w2) + b2, 0.0)
    logits = mm(h2, w3) + b3
    return jax.nn.log_softmax(logits, axis=-1)


if __name__ == "__main__":
    key = jax.random.PRNGKey(0)
    kx, kp = jax.random.split(key)

    # Small batch of flattened "MNIST + 1 extra feature" inputs.
    B = 4
    x = jax.random.normal(kx, (B, IN_DIM), jnp.float32)
    params = init_params(kp)

    out = net_forward(x, params)
    out = jax.block_until_ready(out)

    # Sanity: shape, rows exponentiate-sum to ~1, and match the JAX reference.
    assert out.shape == (B, OUT_DIM)
    row_sums = jnp.sum(jnp.exp(out), axis=-1)
    assert bool(jnp.all(jnp.abs(row_sums - 1.0) < 1e-5))

    ref = reference_forward(x, params)
    assert bool(jnp.all(jnp.abs(out - ref) < 1e-3))

    print("KERNEL_OK")
</pallas_src>

<mosaic_0001>
module attributes {stable_mosaic.version = 11 : i64} {
  func.func @_mlp_kernel(%arg0: i32, %arg1: memref<16x896xbf16, #tpu.memory_space<vmem>>, %arg2: memref<896x128xbf16, #tpu.memory_space<vmem>>, %arg3: memref<1x128xf32, #tpu.memory_space<vmem>>, %arg4: memref<128x128xbf16, #tpu.memory_space<vmem>>, %arg5: memref<1x128xf32, #tpu.memory_space<vmem>>, %arg6: memref<128x128xbf16, #tpu.memory_space<vmem>>, %arg7: memref<1x128xf32, #tpu.memory_space<vmem>>, %arg8: memref<16x128xf32, #tpu.memory_space<vmem>>) attributes {dimension_semantics = [#tpu.dimension_semantics<parallel>], iteration_bounds = array<i64: 1>, scalar_prefetch = 0 : i64, scratch_operands = 0 : i64, tpu.core_type = #tpu.core_type<tc>, window_params = [{transform_indices = @transform_0, window_bounds = array<i64: 16, 896>}, {pipeline_mode = #tpu.pipeline_mode<synchronous>, transform_indices = @transform_1, window_bounds = array<i64: 896, 128>}, {pipeline_mode = #tpu.pipeline_mode<synchronous>, transform_indices = @transform_2, window_bounds = array<i64: 1, 128>}, {pipeline_mode = #tpu.pipeline_mode<synchronous>, transform_indices = @transform_3, window_bounds = array<i64: 128, 128>}, {pipeline_mode = #tpu.pipeline_mode<synchronous>, transform_indices = @transform_4, window_bounds = array<i64: 1, 128>}, {pipeline_mode = #tpu.pipeline_mode<synchronous>, transform_indices = @transform_5, window_bounds = array<i64: 128, 128>}, {pipeline_mode = #tpu.pipeline_mode<synchronous>, transform_indices = @transform_6, window_bounds = array<i64: 1, 128>}, {transform_indices = @transform_7, window_bounds = array<i64: 16, 128>}]} {
    %c0 = arith.constant 0 : index
    %c0_0 = arith.constant 0 : index
    %0 = vector.load %arg1[%c0, %c0_0] : memref<16x896xbf16, #tpu.memory_space<vmem>>, vector<16x896xbf16>
    %c0_1 = arith.constant 0 : index
    %c0_2 = arith.constant 0 : index
    %1 = vector.load %arg2[%c0_1, %c0_2] : memref<896x128xbf16, #tpu.memory_space<vmem>>, vector<896x128xbf16>
    %cst = arith.constant dense<0.000000e+00> : vector<16x128xf32>
    %2 = tpu.matmul %0, %1, %cst {dimension_numbers = #tpu.dot_dimension_numbers<[1], [0], [0], [1], [0, 0, 1, 1], [], []>} : vector<16x896xbf16>, vector<896x128xbf16>, vector<16x128xf32> -> vector<16x128xf32>
    %c0_3 = arith.constant 0 : index
    %c0_4 = arith.constant 0 : index
    %3 = vector.load %arg3[%c0_3, %c0_4] : memref<1x128xf32, #tpu.memory_space<vmem>>, vector<1x128xf32>
    %4 = vector.broadcast %3 : vector<1x128xf32> to vector<16x128xf32>
    %5 = arith.addf %2, %4 : vector<16x128xf32>
    %cst_5 = arith.constant 0.000000e+00 : f32
    %6 = vector.broadcast %cst_5 : f32 to vector<16x128xf32>
    %7 = arith.maximumf %5, %6 : vector<16x128xf32>
    %8 = arith.truncf %7 : vector<16x128xf32> to vector<16x128xbf16>
    %c0_6 = arith.constant 0 : index
    %c0_7 = arith.constant 0 : index
    %9 = vector.load %arg4[%c0_6, %c0_7] : memref<128x128xbf16, #tpu.memory_space<vmem>>, vector<128x128xbf16>
    %cst_8 = arith.constant dense<0.000000e+00> : vector<16x128xf32>
    %10 = tpu.matmul %8, %9, %cst_8 {dimension_numbers = #tpu.dot_dimension_numbers<[1], [0], [0], [1], [0, 0, 1, 1], [], []>} : vector<16x128xbf16>, vector<128x128xbf16>, vector<16x128xf32> -> vector<16x128xf32>
    %c0_9 = arith.constant 0 : index
    %c0_10 = arith.constant 0 : index
    %11 = vector.load %arg5[%c0_9, %c0_10] : memref<1x128xf32, #tpu.memory_space<vmem>>, vector<1x128xf32>
    %12 = vector.broadcast %11 : vector<1x128xf32> to vector<16x128xf32>
    %13 = arith.addf %10, %12 : vector<16x128xf32>
    %cst_11 = arith.constant 0.000000e+00 : f32
    %14 = vector.broadcast %cst_11 : f32 to vector<16x128xf32>
    %15 = arith.maximumf %13, %14 : vector<16x128xf32>
    %16 = arith.truncf %15 : vector<16x128xf32> to vector<16x128xbf16>
    %c0_12 = arith.constant 0 : index
    %c0_13 = arith.constant 0 : index
    %17 = vector.load %arg6[%c0_12, %c0_13] : memref<128x128xbf16, #tpu.memory_space<vmem>>, vector<128x128xbf16>
    %cst_14 = arith.constant dense<0.000000e+00> : vector<16x128xf32>
    %18 = tpu.matmul %16, %17, %cst_14 {dimension_numbers = #tpu.dot_dimension_numbers<[1], [0], [0], [1], [0, 0, 1, 1], [], []>} : vector<16x128xbf16>, vector<128x128xbf16>, vector<16x128xf32> -> vector<16x128xf32>
    %c0_15 = arith.constant 0 : index
    %c0_16 = arith.constant 0 : index
    %19 = vector.load %arg7[%c0_15, %c0_16] : memref<1x128xf32, #tpu.memory_space<vmem>>, vector<1x128xf32>
    %20 = vector.broadcast %19 : vector<1x128xf32> to vector<16x128xf32>
    %21 = arith.addf %18, %20 : vector<16x128xf32>
    %22 = tpu.iota {dimensions = array<i32: 1>} : vector<16x128xi32>
    %c2_i32 = arith.constant 2 : i32
    %23 = vector.broadcast %c2_i32 : i32 to vector<16x128xi32>
    %24 = arith.cmpi slt, %22, %23 : vector<16x128xi32>
    %cst_17 = arith.constant -1.000000e+30 : f32
    %25 = vector.broadcast %cst_17 : f32 to vector<16x128xf32>
    %26 = arith.select %24, %21, %25 : vector<16x128xi1>, vector<16x128xf32>
    %cst_18 = arith.constant dense<0xFF800000> : vector<16xf32>
    %27 = vector.multi_reduction <maximumf>, %26, %cst_18 [1] : vector<16x128xf32> to vector<16xf32>
    %28 = vector.shape_cast %27 : vector<16xf32> to vector<16x1xf32>
    %29 = vector.broadcast %28 : vector<16x1xf32> to vector<16x128xf32>
    %30 = arith.subf %26, %29 : vector<16x128xf32>
    %31 = math.exp %30 : vector<16x128xf32>
    %cst_19 = arith.constant dense<0.000000e+00> : vector<16xf32>
    %32 = vector.multi_reduction <add>, %31, %cst_19 [1] : vector<16x128xf32> to vector<16xf32>
    %33 = vector.shape_cast %32 : vector<16xf32> to vector<16x1xf32>
    %34 = math.log %33 : vector<16x1xf32>
    %35 = vector.broadcast %34 : vector<16x1xf32> to vector<16x128xf32>
    %36 = arith.subf %30, %35 : vector<16x128xf32>
    %c0_20 = arith.constant 0 : index
    %c0_21 = arith.constant 0 : index
    %37 = vector.load %arg8[%c0_20, %c0_21] : memref<16x128xf32, #tpu.memory_space<vmem>>, vector<16x128xf32>
    tpu.vector_store %arg8[%c0_20, %c0_21], %36 {strides = array<i32>} : memref<16x128xf32, #tpu.memory_space<vmem>>, vector<16x128xf32>,
    return
  }
  func.func @transform_0(%arg0: i32) -> (i32, i32) {
    %c0_i32 = arith.constant 0 : i32
    %c0_i32_0 = arith.constant 0 : i32
    return %arg0, %c0_i32 : i32, i32
  }
  func.func @transform_1(%arg0: i32) -> (i32, i32) {
    %c0_i32 = arith.constant 0 : i32
    %c0_i32_0 = arith.constant 0 : i32
    %c0_i32_1 = arith.constant 0 : i32
    return %c0_i32, %c0_i32_0 : i32, i32
  }
  func.func @transform_2(%arg0: i32) -> (i32, i32) {
    %c0_i32 = arith.constant 0 : i32
    %c0_i32_0 = arith.constant 0 : i32
    %c0_i32_1 = arith.constant 0 : i32
    return %c0_i32, %c0_i32_0 : i32, i32
  }
  func.func @transform_3(%arg0: i32) -> (i32, i32) {
    %c0_i32 = arith.constant 0 : i32
    %c0_i32_0 = arith.constant 0 : i32
    %c0_i32_1 = arith.constant 0 : i32
    return %c0_i32, %c0_i32_0 : i32, i32
  }
  func.func @transform_4(%arg0: i32) -> (i32, i32) {
    %c0_i32 = arith.constant 0 : i32
    %c0_i32_0 = arith.constant 0 : i32
    %c0_i32_1 = arith.constant 0 : i32
    return %c0_i32, %c0_i32_0 : i32, i32
  }
  func.func @transform_5(%arg0: i32) -> (i32, i32) {
    %c0_i32 = arith.constant 0 : i32
    %c0_i32_0 = arith.constant 0 : i32
    %c0_i32_1 = arith.constant 0 : i32
    return %c0_i32, %c0_i32_0 : i32, i32
  }
  func.func @transform_6(%arg0: i32) -> (i32, i32) {
    %c0_i32 = arith.constant 0 : i32
    %c0_i32_0 = arith.constant 0 : i32
    %c0_i32_1 = arith.constant 0 : i32
    return %c0_i32, %c0_i32_0 : i32, i32
  }
  func.func @transform_7(%arg0: i32) -> (i32, i32) {
    %c0_i32 = arith.constant 0 : i32
    %c0_i32_0 = arith.constant 0 : i32
    return %arg0, %c0_i32 : i32, i32
  }
}

</mosaic_0001>

<bundles_post_ra>
// kernel: net_forward.1
= control target key start
LH: loop header
LB: loop body
LE: loop exit
PB: predicated region body
PF: predicated region fallthrough
CT: control target
= control target key end

     0   :  { %v1278_v36 = vmov 0.0   ;;  %vm1279_vm0 = vmmov 0   ;;  %s1602_s1 = inlined_call_operand.vmem [shape: bf16[896,128], index: 1, kind: input, shape index: {}]   ;;  %s1603_s0 = inlined_call_operand.vmem [shape: bf16[16,896], index: 0, kind: input, shape index: {}]   ;;  %s1604_s3 = inlined_call_operand.vmem [shape: bf16[128,128], index: 3, kind: input, shape index: {}]   ;;  %s1605_s5 = inlined_call_operand.vmem [shape: bf16[128,128], index: 5, kind: input, shape index: {}]   ;;  %s1606_s2 = inlined_call_operand.vmem [shape: f32[1,128], index: 2, kind: input, shape index: {}]   ;;  %s1607_s4 = inlined_call_operand.vmem [shape: f32[1,128], index: 4, kind: input, shape index: {}]   ;;  %s1608_s6 = inlined_call_operand.vmem [shape: f32[1,128], index: 6, kind: input, shape index: {}]   ;;  %s1609_s7 = inlined_call_operand.vmem [shape: f32[16,128], index: 7, kind: output, shape index: {}]  }
   0x1   :  { %v1188_v0 = vld [vmem:[%s1602_s1 + $0x78] sm:$0xff]   ;;  %v1192_v4 = vld [vmem:[%s1602_s1 + $0x70] sm:$0xff]   ;;  %v1196_v8 = vld [vmem:[%s1602_s1 + $0x68] sm:$0xff]  }
   0x2   :  { %v1189_v1 = vld [vmem:[%s1602_s1 + $0xf8] sm:$0xff]   ;;  %1033 = vmatprep.subr.bf16.mxu0 %v1188_v0  ;;  %v1193_v5 = vld [vmem:[%s1602_s1 + $0xf0] sm:$0xff]   ;;  %v1197_v9 = vld [vmem:[%s1602_s1 + $0xe8] sm:$0xff]  }
   0x3   :  { %v1190_v2 = vld [vmem:[%s1602_s1 + $0x38] sm:$0xff]   ;;  %1055 = vmatprep.subr.bf16.mxu1 %v1189_v1  ;;  %v1194_v6 = vld [vmem:[%s1602_s1 + $0x30] sm:$0xff]   ;;  %v1198_v10 = vld [vmem:[%s1602_s1 + $0x28] sm:$0xff]  }
   0x4   :  { %v1191_v3 = vld [vmem:[%s1602_s1 + $0xb8] sm:$0xff]   ;;  %1034 = vmatpush3.bf16.msra.mxu0 %v1190_v2  ;;  %v1195_v7 = vld [vmem:[%s1602_s1 + $0xb0] sm:$0xff]   ;;  %v1199_v11 = vld [vmem:[%s1602_s1 + $0xa8] sm:$0xff]  }
   0x5   :  { %1056 = vmatpush3.bf16.msra.mxu1 %v1191_v3  ;;  %1035 = vmatprep.subr.bf16.mxu0 %v1192_v4  ;;  %v1200_v12 = vld [vmem:[%s1602_s1 + $0x60] sm:$0xff]   ;;  %v1204_v16 = vld [vmem:[%s1602_s1 + $0x58] sm:$0xff]   ;;  %v1208_v20 = vld [vmem:[%s1602_s1 + $0x50] sm:$0xff]  }
   0x6   :  { %1057 = vmatprep.subr.bf16.mxu1 %v1193_v5  ;;  %v1201_v13 = vld [vmem:[%s1602_s1 + $0xe0] sm:$0xff]   ;;  %v1205_v17 = vld [vmem:[%s1602_s1 + $0xd8] sm:$0xff]   ;;  %v1209_v21 = vld [vmem:[%s1602_s1 + $0xd0] sm:$0xff]  }
   0x7   :  { %v1202_v14 = vld [vmem:[%s1602_s1 + $0x20] sm:$0xff]   ;;  %v1206_v18 = vld [vmem:[%s1602_s1 + $0x18] sm:$0xff]   ;;  %v1210_v22 = vld [vmem:[%s1602_s1 + $0x10] sm:$0xff]  }
   0x8   :  { %1036 = vmatpush3.bf16.msra.mxu0 %v1194_v6  ;;  %v1203_v15 = vld [vmem:[%s1602_s1 + $0xa0] sm:$0xff]   ;;  %v1207_v19 = vld [vmem:[%s1602_s1 + $0x98] sm:$0xff]   ;;  %v1211_v23 = vld [vmem:[%s1602_s1 + $0x90] sm:$0xff]  }
   0x9   :  { %1058 = vmatpush3.bf16.msra.mxu1 %v1195_v7  ;;  %1037 = vmatprep.subr.bf16.mxu0 %v1196_v8  ;;  %v1212_v24 = vld [vmem:[%s1602_s1 + $0x48] sm:$0xff]   ;;  %v1216_v28 = vld [vmem:[%s1602_s1 + $0x40] sm:$0xff]   ;;  %v1226_v37 = vld [vmem:[%s1602_s1 + $0x178] sm:$0xff]  }
   0xa   :  { %1059 = vmatprep.subr.bf16.mxu1 %v1197_v9  ;;  %v1213_v25 = vld [vmem:[%s1602_s1 + $0xc8] sm:$0xff]   ;;  %v1217_v29 = vld [vmem:[%s1602_s1 + $0xc0] sm:$0xff]   ;;  %v1227_v38 = vld [vmem:[%s1602_s1 + $0x138] sm:$0xff]  }
   0xb   :  { %v1214_v26 = vld [vmem:[%s1602_s1 + $0x8] sm:$0xff]   ;;  %v1218_v30 = vld [vmem:[%s1602_s1] sm:$0xff]   ;;  %v1228_v39 = vld [vmem:[%s1602_s1 + $0x1b8] sm:$0xff]  }
   0xc   :  { %1038 = vmatpush3.bf16.msra.mxu0 %v1198_v10  ;;  %v1215_v27 = vld [vmem:[%s1602_s1 + $0x88] sm:$0xff]   ;;  %v1219_v31 = vld [vmem:[%s1602_s1 + $0x80] sm:$0xff]   ;;  %v1229_v40 = vld [vmem:[%s1602_s1 + $0x170] sm:$0xff]  }
   0xd   :  { %1060 = vmatpush3.bf16.msra.mxu1 %v1199_v11  ;;  %1039 = vmatprep.subr.bf16.mxu0 %v1200_v12  ;;  %v1220_v32 = vld [vmem:[%s1603_s0] ss:$28 sps:$4 sm:$0xff]   ;;  %v1223_v34 = vld [vmem:[%s1603_s0 + $0x8] ss:$28 sps:$4 sm:$0xff]   ;;  %v1230_v41 = vld [vmem:[%s1602_s1 + $0x130] sm:$0xff]  }
   0xe   :  { %1061 = vmatprep.subr.bf16.mxu1 %v1201_v13  ;;  %v1222_v33 = vld [vmem:[%s1603_s0 + $0x4] ss:$28 sps:$4 sm:$0xff]   ;;  %v1225_v35 = vld [vmem:[%s1603_s0 + $0xc] ss:$28 sps:$4 sm:$0xff]   ;;  %v1231_v42 = vld [vmem:[%s1602_s1 + $0x1b0] sm:$0xff]  }
   0xf   :  { %558 = vmatprep.mubr.bf16.mxu0 %v1222_v33  ;;  %599 = vmatprep.mubr.bf16.mxu1 %v1225_v35  ;;  %v1232_v43 = vld [vmem:[%s1602_s1 + $0x168] sm:$0xff]   ;;  %v1235_v46 = vld [vmem:[%s1602_s1 + $0x160] sm:$0xff]   ;;  %v1238_v49 = vld [vmem:[%s1602_s1 + $0x158] sm:$0xff]  }
  0x10   :  { %1040 = vmatpush3.bf16.msra.mxu0 %v1202_v14  ;;  %v1233_v44 = vld [vmem:[%s1602_s1 + $0x128] sm:$0xff]   ;;  %v1236_v47 = vld [vmem:[%s1602_s1 + $0x120] sm:$0xff]   ;;  %v1239_v50 = vld [vmem:[%s1602_s1 + $0x118] sm:$0xff]  }
  0x11   :  { %1062 = vmatpush3.bf16.msra.mxu1 %v1203_v15  ;;  %1041 = vmatprep.subr.bf16.mxu0 %v1204_v16  ;;  %v1234_v45 = vld [vmem:[%s1602_s1 + $0x1a8] sm:$0xff]   ;;  %v1237_v48 = vld [vmem:[%s1602_s1 + $0x1a0] sm:$0xff]   ;;  %v1240_v51 = vld [vmem:[%s1602_s1 + $0x198] sm:$0xff]  }
  0x12   :  { %1063 = vmatprep.subr.bf16.mxu1 %v1205_v17  ;;  %v1241_v52 = vld [vmem:[%s1602_s1 + $0x150] sm:$0xff]   ;;  %v1244_v55 = vld [vmem:[%s1602_s1 + $0x148] sm:$0xff]   ;;  %v1247_v58 = vld [vmem:[%s1602_s1 + $0x140] sm:$0xff]  }
  0x13   :  { %v1242_v53 = vld [vmem:[%s1602_s1 + $0x110] sm:$0xff]   ;;  %v1245_v56 = vld [vmem:[%s1602_s1 + $0x108] sm:$0xff]   ;;  %v1248_v60 = vld [vmem:[%s1602_s1 + $0x100] sm:$0xff]  }
  0x14   :  { %1042 = vmatpush3.bf16.msra.mxu0 %v1206_v18  ;;  %v1243_v54 = vld [vmem:[%s1602_s1 + $0x190] sm:$0xff]   ;;  %v1246_v57 = vld [vmem:[%s1602_s1 + $0x188] sm:$0xff]   ;;  %v1249_v61 = vld [vmem:[%s1602_s1 + $0x180] sm:$0xff]  }
  0x15   :  { %1064 = vmatpush3.bf16.msra.mxu1 %v1207_v19  ;;  %1043 = vmatprep.subr.bf16.mxu0 %v1208_v20  ;;  %v1252_v59 = vld [vmem:[%s1603_s0 + $0x14] ss:$28 sps:$4 sm:$0xff]   ;;  %v1254_v0 = vld [vmem:[%s1604_s3 + $0x38] sm:$0xff]   ;;  %v1256_v2 = vld [vmem:[%s1604_s3 + $0x28] sm:$0xff]  }
  0x16   :  { %1065 = vmatprep.subr.bf16.mxu1 %v1209_v21  ;;  %v1250_v62 = vld [vmem:[%s1603_s0 + $0x10] ss:$28 sps:$4 sm:$0xff]   ;;  %v1253_v63 = vld [vmem:[%s1603_s0 + $0x18] ss:$28 sps:$4 sm:$0xff]   ;;  %v1257_v3 = vld [vmem:[%s1604_s3 + $0x20] sm:$0xff]  }
  0x17   :  { %v1255_v1 = vld [vmem:[%s1604_s3 + $0x30] sm:$0xff]   ;;  %v1258_v4 = vld [vmem:[%s1604_s3 + $0x18] sm:$0xff]   ;;  %v1260_v6 = vld [vmem:[%s1604_s3 + $0x8] sm:$0xff]  }
  0x18   :  { %1044 = vmatpush3.bf16.msra.mxu0 %v1210_v22  ;;  %v1259_v5 = vld [vmem:[%s1604_s3 + $0x10] sm:$0xff]   ;;  %v1261_v7 = vld [vmem:[%s1604_s3] sm:$0xff]   ;;  %v1262_v8 = vld [vmem:[%s1605_s5 + $0x38] sm:$0xff]  }
  0x19   :  { %1066 = vmatpush3.bf16.msra.mxu1 %v1211_v23  ;;  %1045 = vmatprep.subr.bf16.mxu0 %v1212_v24  ;;  %v1263_v9 = vld [vmem:[%s1605_s5 + $0x30] sm:$0xff]   ;;  %v1264_v10 = vld [vmem:[%s1605_s5 + $0x28] sm:$0xff]   ;;  %v1265_v11 = vld [vmem:[%s1605_s5 + $0x20] sm:$0xff]  }
  0x1a   :  { %1067 = vmatprep.subr.bf16.mxu1 %v1213_v25  ;;  %v1266_v12 = vld [vmem:[%s1605_s5 + $0x18] sm:$0xff]   ;;  %v951_v20 = vld [vmem:[%s1606_s2] ss:$0 sm:$0xff] }
  0x1c   :  { %1046 = vmatpush3.bf16.msra.mxu0 %v1214_v26 }
  0x1d   :  { %1068 = vmatpush3.bf16.msra.mxu1 %v1215_v27  ;;  %1047 = vmatprep.subr.bf16.mxu0 %v1216_v28 }
  0x1e   :  { %1069 = vmatprep.subr.bf16.mxu1 %v1217_v29 }
  0x20   :  { %1048 = vmatpush3.bf16.msra.mxu0 %v1218_v30 }
  0x21   :  { %1070 = vmatpush3.bf16.msra.mxu1 %v1219_v31  ;;  %1077 = vmatprep.subr.bf16.mxu0 %v1226_v37 }
  0x22   :  { %1126 = vmatprep.subr.bf16.mxu1 %v1278_v36 }
  0x23   :  { %559 = vmatmul.mubr.bf16.vlgmr.msra.gmra.mxu0 %v1220_v32 }
  0x24   :  { %600 = vmatmul.mubr.bf16.vlgmr.msra.gmra.mxu1 %v1223_v34  ;;  %1078 = vmatpush3.bf16.msra.mxu0 %v1227_v38 }
  0x25   :  { %1142 = vmatprep.mubr.msk.bf16.mxu1 %vm1279_vm0, %v1278_v36  ;;  %1127 = vmatpush3.bf16.msra.mxu1 %v1228_v39 }
  0x26   :  { %1079 = vmatprep.subr.bf16.mxu0 %v1229_v40  ;;  %1128 = vmatprep.subr.bf16.mxu1 %v1278_v36 }
  0x27   :  { %640 = vmatprep.mubr.bf16.mxu0 %v1252_v59 }
  0x28   :  { %1080 = vmatpush3.bf16.msra.mxu0 %v1230_v41 }
  0x29   :  { %1129 = vmatpush3.bf16.msra.mxu1 %v1231_v42  ;;  %1081 = vmatprep.subr.bf16.mxu0 %v1232_v43 }
  0x2a   :  { %1130 = vmatprep.subr.bf16.mxu1 %v1278_v36 }
  0x2c   :  { %1082 = vmatpush3.bf16.msra.mxu0 %v1233_v44 }
  0x2d   :  { %1131 = vmatpush3.bf16.msra.mxu1 %v1234_v45  ;;  %1083 = vmatprep.subr.bf16.mxu0 %v1235_v46 }
  0x2e   :  { %1132 = vmatprep.subr.bf16.mxu1 %v1278_v36 }
  0x30   :  { %1084 = vmatpush3.bf16.msra.mxu0 %v1236_v47 }
  0x31   :  { %1133 = vmatpush3.bf16.msra.mxu1 %v1237_v48  ;;  %1085 = vmatprep.subr.bf16.mxu0 %v1238_v49  ;;  %v1267_v48 = vld [vmem:[%s1605_s5 + $0x10] sm:$0xff]   ;;  %v1268_v49 = vld [vmem:[%s1605_s5 + $0x8] sm:$0xff]  }
  0x32   :  { %1134 = vmatprep.subr.bf16.mxu1 %v1278_v36 }
  0x34   :  { %1086 = vmatpush3.bf16.msra.mxu0 %v1239_v50  ;;  %v1269_v50 = vld [vmem:[%s1605_s5] sm:$0xff]  }
  0x35   :  { %1135 = vmatpush3.bf16.msra.mxu1 %v1240_v51  ;;  %1087 = vmatprep.subr.bf16.mxu0 %v1241_v52  ;;  %v1015_v51 = vld [vmem:[%s1607_s4] ss:$0 sm:$0xff] }
  0x36   :  { %1136 = vmatprep.subr.bf16.mxu1 %v1278_v36 }
  0x38   :  { %1088 = vmatpush3.bf16.msra.mxu0 %v1242_v53 }
  0x39   :  { %1137 = vmatpush3.bf16.msra.mxu1 %v1243_v54  ;;  %1089 = vmatprep.subr.bf16.mxu0 %v1244_v55 }
  0x3a   :  { %1138 = vmatprep.subr.bf16.mxu1 %v1278_v36 }
  0x3c   :  { %1090 = vmatpush3.bf16.msra.mxu0 %v1245_v56 }
  0x3d   :  { %1139 = vmatpush3.bf16.msra.mxu1 %v1246_v57  ;;  %1091 = vmatprep.subr.bf16.mxu0 %v1247_v58 }
  0x3e   :  { %1140 = vmatprep.subr.bf16.mxu1 %v1278_v36 }
  0x40   :  { %1092 = vmatpush3.bf16.msra.mxu0 %v1248_v60 }
  0x41   :  { %1141 = vmatpush3.bf16.msra.mxu1 %v1249_v61  ;;  %1146 = vmatprep.subr.bf16.mxu0 %v1278_v36 }
  0x42   :  { %1166 = vmatprep.subr.bf16.mxu1 %v1278_v36 }
  0x43   :  { %641 = vmatmul.mubr.bf16.vlgmr.msra.gmra.mxu0 %v1250_v62  ;;  %v1024_v62 = vld [vmem:[%s1608_s6] ss:$0 sm:$0xff] }
  0x44   :  { %1143 = vmatmul.mubr.bf16.vlgmr.msra.gmra.mxu1 %v1253_v63  ;;  %1162 = vmatprep.mubr.msk.bf16.mxu0 %vm1279_vm0, %v1278_v36 }
  0x45   :  { %1182 = vmatprep.mubr.msk.bf16.mxu1 %vm1279_vm0, %v1278_v36  ;;  %1147 = vmatpush3.bf16.msra.mxu0 %v1254_v0 }
  0x46   :  { %1148 = vmatprep.subr.bf16.mxu0 %v1278_v36  ;;  %1167 = vmatpush3.bf16.msra.mxu1 %v1262_v8 }
  0x47   :  { %1168 = vmatprep.subr.bf16.mxu1 %v1278_v36 }
  0x49   :  { %1149 = vmatpush3.bf16.msra.mxu0 %v1255_v1 }
  0x4a   :  { %1150 = vmatprep.subr.bf16.mxu0 %v1278_v36  ;;  %1169 = vmatpush3.bf16.msra.mxu1 %v1263_v9 }
  0x4b   :  { %1170 = vmatprep.subr.bf16.mxu1 %v1278_v36 }
  0x4d   :  { %1151 = vmatpush3.bf16.msra.mxu0 %v1256_v2 }
  0x4e   :  { %1152 = vmatprep.subr.bf16.mxu0 %v1278_v36  ;;  %1171 = vmatpush3.bf16.msra.mxu1 %v1264_v10 }
  0x4f   :  { %1172 = vmatprep.subr.bf16.mxu1 %v1278_v36 }
  0x51   :  { %1153 = vmatpush3.bf16.msra.mxu0 %v1257_v3 }
  0x52   :  { %1154 = vmatprep.subr.bf16.mxu0 %v1278_v36  ;;  %1173 = vmatpush3.bf16.msra.mxu1 %v1265_v11 }
  0x53   :  { %1174 = vmatprep.subr.bf16.mxu1 %v1278_v36 }
  0x55   :  { %1155 = vmatpush3.bf16.msra.mxu0 %v1258_v4 }
  0x56   :  { %1156 = vmatprep.subr.bf16.mxu0 %v1278_v36  ;;  %1175 = vmatpush3.bf16.msra.mxu1 %v1266_v12 }
  0x57   :  { %1176 = vmatprep.subr.bf16.mxu1 %v1278_v36 }
  0x59   :  { %1157 = vmatpush3.bf16.msra.mxu0 %v1259_v5 }
  0x5a   :  { %1158 = vmatprep.subr.bf16.mxu0 %v1278_v36  ;;  %1177 = vmatpush3.bf16.msra.mxu1 %v1267_v48 }
  0x5b   :  { %1178 = vmatprep.subr.bf16.mxu1 %v1278_v36 }
  0x5d   :  { %1159 = vmatpush3.bf16.msra.mxu0 %v1260_v6 }
  0x5e   :  { %1160 = vmatprep.subr.bf16.mxu0 %v1278_v36  ;;  %1179 = vmatpush3.bf16.msra.mxu1 %v1268_v49 }
  0x5f   :  { %1180 = vmatprep.subr.bf16.mxu1 %v1278_v36  ;;  %v920_v36 = vlaneseq }
  0x61   :  { %1161 = vmatpush3.bf16.msra.mxu0 %v1261_v7  ;;  %v921_v61 = vand.u32 127, %v920_v36 }
  0x62   :  { %1181 = vmatpush3.bf16.msra.mxu1 %v1269_v50 }
  0x63   :  { %vm922_vm1 = vcmp.lt.s32.totalorder %v921_v61, 2 }
  0xe3   :  { %v1049_v13 = vpop.f32.mrf.mxu0 }
  0xe4   :  { %v1071_v14 = vpop.f32.mrf.mxu1 }
  0xe5   :  { %v1050_v15 = vpop.f32.mrf.mxu0 }
  0xe6   :  { %v1072_v16 = vpop.f32.mrf.mxu1  ;;  %v1051_v18 = vadd.f32 %v1050_v15, %v1049_v13 }
  0xe7   :  { %v1052_v17 = vpop.f32.mrf.mxu0  ;;  %v1073_v23 = vadd.f32 %v1072_v16, %v1071_v14 }
  0xe8   :  { %v1074_v19 = vpop.f32.mrf.mxu1  ;;  %v561_v22 = vadd.f32 %v1051_v18, %v951_v20 }
  0xe9   :  { %v1053_v21 = vpop.f32.mrf.mxu0 }
  0xea   :  { %v1054_v24 = vadd.f32 %v1053_v21, %v1052_v17  ;;  %v1075_v25 = vpop.f32.mrf.mxu1  ;;  %v602_v29 = vadd.f32 %v1073_v23, %v561_v22 }
  0xeb   :  { %v1076_v31 = vadd.f32 %v1075_v25, %v1074_v19 }
  0xec   :  { %v564_v30 = vadd.f32 %v1054_v24, %v951_v20 }
  0xee   :  { %v605_v39 = vadd.f32 %v1076_v31, %v564_v30 }
 0x103   :  { %v1093_v26 = vpop.f32.mrf.mxu0 }
 0x104   :  { %v683_v27 = vpop.f32.mrf.mxu1 }
 0x105   :  { %v1094_v28 = vpop.f32.mrf.mxu0 }
 0x106   :  { %v1095_v32 = vadd.f32 %v1094_v28, %v1093_v26  ;;  %v1144_v33 = vpop.f32.mrf.mxu1 }
 0x107   :  { %v1096_v34 = vpop.f32.mrf.mxu0 }
 0x108   :  { %v643_v35 = vadd.f32 %v1095_v32, %v602_v29  ;;  %v686_v37 = vpop.f32.mrf.mxu1 }
 0x109   :  { %v1097_v38 = vpop.f32.mrf.mxu0 }
 0x10a   :  { %v1098_v40 = vadd.f32 %v1097_v38, %v1096_v34  ;;  %v1145_v41 = vpop.f32.mrf.mxu1  ;;  %v684_v42 = vadd.f32 %v683_v27, %v643_v35 }
 0x10c   :  { %v646_v43 = vadd.f32 %v1098_v40, %v605_v39  ;;  %v690_v45 = vmax.f32 %v684_v42, 0.0 }
 0x10e   :  { %v687_v44 = vadd.f32 %v686_v37, %v646_v43 }
 0x110   :  { %v691_v46 = vmax.f32 %v687_v44, 0.0 }
 0x112   :  { %v692_v47 = vpack.c.bf16 %v691_v46, %v690_v45 }
 0x114   :  { %1163 = vmatmul.mubr.bf16.vlgmr.msra.gmra.mxu0 %v692_v47 }
 0x1d4   :  { %v798_v52 = vpop.f32.mrf.mxu0 }
 0x1d5   :  { %v799_v54 = vadd.f32 %v1015_v51, %v798_v52 }
 0x1d6   :  { %v1164_v53 = vpop.f32.mrf.mxu0 }
 0x1d7   :  { %v805_v58 = vmax.f32 %v799_v54, 0.0 }
 0x1d8   :  { %v801_v55 = vpop.f32.mrf.mxu0 }
 0x1d9   :  { %v802_v56 = vadd.f32 %v1015_v51, %v801_v55 }
 0x1da   :  { %v1165_v57 = vpop.f32.mrf.mxu0 }
 0x1db   :  { %v806_v59 = vmax.f32 %v802_v56, 0.0 }
 0x1dd   :  { %v807_v60 = vpack.c.bf16 %v806_v59, %v805_v58 }
 0x1df   :  { %1183 = vmatmul.mubr.bf16.vlgmr.msra.gmra.mxu1 %v807_v60 }
 0x29f   :  { %v913_v63 = vpop.f32.mrf.mxu1 }
 0x2a0   :  { %v914_v0 = vadd.f32 %v1024_v62, %v913_v63 }
 0x2a1   :  { %v1184_v1 = vpop.f32.mrf.mxu1 }
 0x2a2   :  { %v923_v2 = vsel %vm922_vm1, %v914_v0, -1e+30 }
 0x2a3   :  { %925 = vmax.xlane.f32.xlu0 %v923_v2  ;;  %v916_v3 = vpop.f32.mrf.mxu1 }
 0x2a4   :  { %v917_v4 = vadd.f32 %v1024_v62, %v916_v3 }
 0x2a5   :  { %v1185_v5 = vpop.f32.mrf.mxu1 }
 0x2a6   :  { %v924_v6 = vsel %vm922_vm1, %v917_v4, -1e+30 }
 0x2a7   :  { %927 = vmax.xlane.f32.xlu0 %v924_v6 }
 0x32c   :  { %v926_v7 = vpop.xlane.xlu0 %925 }
 0x32d   :  { %v929_v8 = vsub.f32 %v923_v2, %v926_v7 }
 0x32f   :  { %v931_v9 = vmul.f32 1.442695, %v929_v8 }
 0x330   :  { %v928_v10 = vpop.xlane.xlu0 %927 }
 0x331   :  { %v930_v11 = vsub.f32 %v924_v6, %v928_v10  ;;  %1270 = vpow2.f32 %v931_v9 }
 0x333   :  { %v933_v12 = vmul.f32 1.442695, %v930_v11 }
 0x335   :  { %1272 = vpow2.f32 %v933_v12 }
 0x33e   :  { %v1271_v13 = vpop.eup %1270 }
 0x33f   :  { %935 = vadd.xlane.f32.xlu1 %v1271_v13 }
 0x342   :  { %v1273_v14 = vpop.eup %1272 }
 0x343   :  { %937 = vadd.xlane.f32.xlu1 %v1273_v14 }
 0x3c8   :  { %v936_v15 = vpop.xlane.xlu1 %935 }
 0x3c9   :  { %1274 = vlog2.f32 %v936_v15 }
 0x3cc   :  { %v938_v16 = vpop.xlane.xlu1 %937 }
 0x3cd   :  { %1276 = vlog2.f32 %v938_v16 }
 0x3d6   :  { %v1275_v17 = vpop.eup %1274 }
 0x3d7   :  { %v940_v18 = vmul.f32 0.6931472, %v1275_v17 }
 0x3d9   :  { %v943_v19 = vsub.f32 %v929_v8, %v940_v18 }
 0x3da   :  { %v1277_v20 = vpop.eup %1276 }
 0x3db   :  { %945 = vst [vmem:[%s1609_s7] sm:$0xff] %v943_v19  ;;  %v942_v21 = vmul.f32 0.6931472, %v1277_v20 }
 0x3dd   :  { %v944_v22 = vsub.f32 %v930_v11, %v942_v21 }
 0x3df   :  { %946 = vst [vmem:[%s1609_s7 + $0x8] sm:$0xff] %v944_v22 }

</bundles_post_ra>
